<compile_context>
chip_gen: v7x
topology: tpu7x:2x2x1
jax: 0.10.0
libtpu: 0.0.40
codegen_flags: <defaults>
</compile_context>

<pallas_src>
import functools
import math

import jax
import jax.numpy as jnp
from jax.experimental import pallas as pl
from jax.experimental.pallas import tpu as pltpu


def _round_up(n, m):
    return ((n + m - 1) // m) * m


def _ceil_div(a, b):
    return -(-a // b)


# ----------------------------- Pallas kernel --------------------------------
def _policy_kernel(set_ref, ego_ref,
                   pw1_ref, wpr_ref, mw1a_ref, wgh_ref, mw2_ref,
                   dbias_ref, mb1_ref, mb2_ref,
                   out_ref, *, n_set_pad):
    f32 = jnp.float32
    bf16 = jnp.bfloat16

    set_x = set_ref[...]                 # (TB*n_set_pad, D)  bf16
    ego = ego_ref[...]                   # (TB, D)            bf16
    db = dbias_ref[...]                  # (3, R) f32: [pb1, b_pr, pad_corr]

    # ---- DeepSet phi L1 + ReLU: single 2-D MXU matmul over all batch*set rows
    h1 = jnp.dot(set_x, pw1_ref[...], preferred_element_type=f32) + db[0]
    h1 = jnp.maximum(h1, 0.0)                                   # (TB*n_set_pad, R)

    # ---- sublane-aligned sum-pool over the set axis; remove the exact
    #      contribution of the zero-padded set rows (n_pad * relu(pb1)).
    tb = ego.shape[0]
    r = h1.shape[-1]
    pooled = jnp.sum(h1.reshape(tb, n_set_pad, r), axis=1) - db[2]   # (TB, R) f32

    # ---- fused (phi-L2 · rho-L1) + ReLU: one (TB,R)@(R,R) matmul
    g = jnp.maximum(
        jnp.dot(pooled.astype(bf16), wpr_ref[...], preferred_element_type=f32)
        + db[1], 0.0)                                           # (TB, R) f32

    # ---- head L1: ego part + fused (rho-L2 · head-W1b) part, bias pre-folded
    z = (jnp.dot(ego, mw1a_ref[...], preferred_element_type=f32)
         + jnp.dot(g.astype(bf16), wgh_ref[...], preferred_element_type=f32)
         + mb1_ref[...])
    z = jnp.maximum(z, 0.0)                                     # (TB, H) f32

    # ---- head L2 into a lane-dense (TB, 128) logit slab (padded cols = -1e30)
    logits = jnp.dot(z.astype(bf16), mw2_ref[...],
                     preferred_element_type=f32) + mb2_ref[...]

    # ---- exact, numerically stable softmax over the padded action dim
    m = jnp.max(logits, axis=1, keepdims=True)
    e = jnp.exp(logits - m)
    out_ref[...] = e / jnp.sum(e, axis=1, keepdims=True)


# ------------------------------- Wrapper -------------------------------------
def deep_set_policy_forward(x, params, *, batch_tile=2048):
    """x: (B, N, D) float32. Returns softmax policy (B, action_dim) float32."""
    B, N, D = x.shape
    n_set = N - 1
    (pw1, pb1, pw2, pb2, rw1, rb1, rw2, rb2, mw1, mb1, mw2, mb2) = params
    R = pw1.shape[1]
    H = mw1.shape[1]
    A = mw2.shape[1]

    f32 = jnp.float32
    bf16 = jnp.bfloat16

    # Lane-dense output width and sublane-aligned set size.
    A_pad = max(128, _round_up(A, 128))
    n_set_pad = max(8, _round_up(n_set, 8))
    n_pad = n_set_pad - n_set

    # --- VMEM budget (generation-aware). v5e/v6e: 128 MiB phys -> 64 MiB scoped,
    #     v7x: 64 MiB phys -> 32 MiB scoped. Conservative fallback if query fails.
    try:
        phys_vmem = int(pltpu.get_tpu_info().vmem_capacity_bytes)
    except Exception:  # pragma: no cover - conservative (v7x-sized) fallback
        phys_vmem = 64 * 1024 * 1024
    vmem_limit = min(phys_vmem // 2, 96 * 1024 * 1024)

    # --- divisor-aware batch tile: bounds zero-row padding to <8 rows per tile,
    #     keeps >=2 grid steps when possible so both v7x TensorCores get work.
    n_steps = max(1, _ceil_div(B, max(8, int(batch_tile))))
    if n_steps == 1 and B > 8:
        n_steps = 2
    TB = _round_up(_ceil_div(B, n_steps), 8)

    def _footprint(tb):
        set_in = tb * n_set_pad * D * 2 * 2        # bf16, double-buffered
        ego_in = tb * D * 2 * 2
        out = tb * A_pad * 4 * 2                   # f32 output, double-buffered
        h1 = tb * n_set_pad * R * 4                # largest live intermediate
        work = tb * (3 * R + 2 * H + 2 * A_pad) * 4
        weights = (D * R + R * R + D * H + R * H + H * A_pad) * 2 \
            + (3 * R + H + A_pad) * 4
        return set_in + ego_in + out + h1 + work + weights

    while TB > 8 and _footprint(TB) > int(0.6 * vmem_limit):
        TB = max(8, _round_up(TB // 2, 8))

    n_steps = _ceil_div(B, TB)
    Bp = n_steps * TB
    if Bp != B:
        x = jnp.pad(x, ((0, Bp - B), (0, 0), (0, 0)))

    # --- glue slicing / flattening (free XLA ops). bf16 MXU operands, f32 acc.
    ego = x[:, 0, :].astype(bf16)                                  # (Bp, D)
    set_x = x[:, 1:, :]
    if n_pad:
        set_x = jnp.pad(set_x, ((0, 0), (0, n_pad), (0, 0)))       # zero set rows
    flat_set = set_x.reshape(Bp * n_set_pad, D).astype(bf16)       # (Bp*n_set_pad, D)

    # --- algebraic fusions (f32 pre-multiplies, single bf16 cast afterwards)
    w_pr = pw2.astype(f32) @ rw1.astype(f32)                       # (R, R)
    b_pr = (float(n_set) * pb2.astype(f32)) @ rw1.astype(f32) + rb1.astype(f32)
    mw1a = mw1[:D, :]                                              # (D, H)
    mw1b = mw1[D:, :].astype(f32)                                  # (R, H)
    w_gh = rw2.astype(f32) @ mw1b                                  # (R, H)
    mb1f = mb1.astype(f32) + rb2.astype(f32) @ mw1b                # (1, H)
    # Exact correction for the zero-padded set rows: each contributes relu(pb1).
    pad_corr = float(n_pad) * jnp.maximum(pb1.astype(f32), 0.0)    # (1, R)

    # --- lane-dense head: pad action columns; padded logits get a huge negative
    #     bias so softmax assigns them exactly zero probability.
    mw2p = jnp.pad(mw2.astype(f32), ((0, 0), (0, A_pad - A)))
    mb2p = jnp.pad(mb2.astype(f32), ((0, 0), (0, A_pad - A)),
                   constant_values=-1e30)

    dbias = jnp.concatenate([pb1.astype(f32), b_pr, pad_corr], axis=0)  # (3, R)

    args = (flat_set, ego,
            pw1.astype(bf16), w_pr.astype(bf16),
            mw1a.astype(bf16), w_gh.astype(bf16), mw2p.astype(bf16),
            dbias, mb1f, mb2p)

    flops = 2 * Bp * (n_set_pad * D * R + R * R + D * H + R * H + H * A_pad)
    bytes_accessed = (sum(int(a.size) * a.dtype.itemsize for a in args)
                      + Bp * A_pad * 4)

    def _call(weight_spec_fn):
        in_specs = [
            pl.BlockSpec((TB * n_set_pad, D), lambda i: (i, 0)),   # set block
            pl.BlockSpec((TB, D), lambda i: (i, 0)),               # ego block
        ] + [weight_spec_fn(a) for a in args[2:]]                  # resident weights
        out_spec = pl.BlockSpec((TB, A_pad), lambda i: (i, 0))
        return pl.pallas_call(
            functools.partial(_policy_kernel, n_set_pad=n_set_pad),
            out_shape=jax.ShapeDtypeStruct((Bp, A_pad), jnp.float32),
            grid_spec=pltpu.PrefetchScalarGridSpec(
                num_scalar_prefetch=0,
                grid=(n_steps,),
                in_specs=in_specs,
                out_specs=out_spec,
            ),
            compiler_params=pltpu.CompilerParams(
                dimension_semantics=("parallel",),
                vmem_limit_bytes=vmem_limit,
            ),
            cost_estimate=pl.CostEstimate(
                flops=flops, transcendentals=Bp * A_pad,
                bytes_accessed=bytes_accessed),
        )(*args)

    # Weights/biases: constant index_map -> VMEM-resident; request a single
    # buffer to avoid 2x VMEM for them. Fall back to default buffering if this
    # jax version rejects pipeline_mode here.
    single = lambda a: pl.BlockSpec(a.shape, lambda i: (0, 0),
                                    pipeline_mode=pl.Buffered(1))
    default = lambda a: pl.BlockSpec(a.shape, lambda i: (0, 0))
    try:
        out = _call(single)
    except Exception:
        out = _call(default)

    return out[:B, :A]


# --------------------------- Pure-JAX reference -------------------------------
def _reference_forward(x, params):
    (pw1, pb1, pw2, pb2, rw1, rb1, rw2, rb2, mw1, mb1, mw2, mb2) = params
    set_x = x[:, 1:, :]
    h = jnp.maximum(jnp.einsum('bnd,dr->bnr', set_x, pw1) + pb1[None], 0.0)
    h = jnp.einsum('bnr,rs->bns', h, pw2) + pb2[None]
    pooled = jnp.sum(h, axis=1)
    g = jnp.maximum(pooled @ rw1 + rb1, 0.0)
    rep = g @ rw2 + rb2
    cat = jnp.concatenate([x[:, 0, :], rep], axis=1)
    z = jnp.maximum(cat @ mw1 + mb1, 0.0)
    logits = z @ mw2 + mb2
    return jax.nn.softmax(logits, axis=1)


# --------------------------- Parameter init ----------------------------------
def _linear_init(key, fan_in, fan_out):
    """PyTorch nn.Linear default init: U(-1/sqrt(fan_in), 1/sqrt(fan_in))."""
    kw, kb = jax.random.split(key)
    bound = 1.0 / math.sqrt(fan_in)
    w_ = jax.random.uniform(kw, (fan_in, fan_out), jnp.float32, -bound, bound)
    b_ = jax.random.uniform(kb, (1, fan_out), jnp.float32, -bound, bound)
    return w_, b_


def init_params(key, state_dim, hidden_dim, action_dim, representation_dim):
    ks = jax.random.split(key, 6)
    pw1, pb1 = _linear_init(ks[0], state_dim, representation_dim)           # phi L1
    pw2, pb2 = _linear_init(ks[1], representation_dim, representation_dim)  # phi L2
    rw1, rb1 = _linear_init(ks[2], representation_dim, representation_dim)  # rho L1
    rw2, rb2 = _linear_init(ks[3], representation_dim, representation_dim)  # rho L2
    mw1, mb1 = _linear_init(ks[4], state_dim + representation_dim, hidden_dim)
    mw2, mb2 = _linear_init(ks[5], hidden_dim, action_dim)
    return (pw1, pb1, pw2, pb2, rw1, rb1, rw2, rb2, mw1, mb1, mw2, mb2)


# ------------------------------- Demo ----------------------------------------
if __name__ == "__main__":
    key = jax.random.PRNGKey(0)
    kx1, kp1, kx2, kp2 = jax.random.split(key, 4)

    state_dim, hidden_dim, action_dim = 16, 32, 8
    representation_dim = 32              # small synthetic stand-in for 256

    # Case 1: n_set = 8 (already sublane-aligned); batch_tile=8 -> 2-step grid
    # (exercises the pipelining / megacore path).
    B, N = 16, 9
    x = jax.random.normal(kx1, (B, N, state_dim), jnp.float32)
    params = init_params(kp1, state_dim, hidden_dim, action_dim, representation_dim)
    out = jax.block_until_ready(deep_set_policy_forward(x, params, batch_tile=8))
    ref = _reference_forward(x, params)
    assert out.shape == (B, action_dim)
    assert bool(jnp.all(jnp.abs(jnp.sum(out, axis=1) - 1.0) < 1e-4))
    assert bool(jnp.max(jnp.abs(out - ref)) < 5e-2)

    # Case 2: ragged sizes — n_set = 5 (padded to 8), B = 13 (padded batch tiles)
    # exercises the zero-row set padding + exact pooled correction.
    B2, N2 = 13, 6
    x2 = jax.random.normal(kx2, (B2, N2, state_dim), jnp.float32)
    params2 = init_params(kp2, state_dim, hidden_dim, action_dim, representation_dim)
    out2 = jax.block_until_ready(deep_set_policy_forward(x2, params2))
    ref2 = _reference_forward(x2, params2)
    assert out2.shape == (B2, action_dim)
    assert bool(jnp.all(jnp.abs(jnp.sum(out2, axis=1) - 1.0) < 1e-4))
    assert bool(jnp.max(jnp.abs(out2 - ref2)) < 5e-2)

    print("KERNEL_OK")
</pallas_src>

<mosaic_0001>
module attributes {stable_mosaic.version = 11 : i64} {
  func.func @_policy_kernel(%arg0: i32, %arg1: memref<64x16xbf16, #tpu.memory_space<vmem>>, %arg2: memref<8x16xbf16, #tpu.memory_space<vmem>>, %arg3: memref<16x32xbf16, #tpu.memory_space<vmem>>, %arg4: memref<32x32xbf16, #tpu.memory_space<vmem>>, %arg5: memref<16x32xbf16, #tpu.memory_space<vmem>>, %arg6: memref<32x32xbf16, #tpu.memory_space<vmem>>, %arg7: memref<32x128xbf16, #tpu.memory_space<vmem>>, %arg8: memref<3x32xf32, #tpu.memory_space<vmem>>, %arg9: memref<1x32xf32, #tpu.memory_space<vmem>>, %arg10: memref<1x128xf32, #tpu.memory_space<vmem>>, %arg11: memref<8x128xf32, #tpu.memory_space<vmem>>) attributes {dimension_semantics = [#tpu.dimension_semantics<parallel>], iteration_bounds = array<i64: 2>, scalar_prefetch = 0 : i64, scratch_operands = 0 : i64, tpu.core_type = #tpu.core_type<tc>, window_params = [{transform_indices = @transform_0, window_bounds = array<i64: 64, 16>}, {transform_indices = @transform_1, window_bounds = array<i64: 8, 16>}, {pipeline_mode = #tpu.pipeline_mode<synchronous>, transform_indices = @transform_2, window_bounds = array<i64: 16, 32>}, {pipeline_mode = #tpu.pipeline_mode<synchronous>, transform_indices = @transform_3, window_bounds = array<i64: 32, 32>}, {pipeline_mode = #tpu.pipeline_mode<synchronous>, transform_indices = @transform_4, window_bounds = array<i64: 16, 32>}, {pipeline_mode = #tpu.pipeline_mode<synchronous>, transform_indices = @transform_5, window_bounds = array<i64: 32, 32>}, {pipeline_mode = #tpu.pipeline_mode<synchronous>, transform_indices = @transform_6, window_bounds = array<i64: 32, 128>}, {pipeline_mode = #tpu.pipeline_mode<synchronous>, transform_indices = @transform_7, window_bounds = array<i64: 3, 32>}, {pipeline_mode = #tpu.pipeline_mode<synchronous>, transform_indices = @transform_8, window_bounds = array<i64: 1, 32>}, {pipeline_mode = #tpu.pipeline_mode<synchronous>, transform_indices = @transform_9, window_bounds = array<i64: 1, 128>}, {transform_indices = @transform_10, window_bounds = array<i64: 8, 128>}]} {
    %c0 = arith.constant 0 : index
    %c0_0 = arith.constant 0 : index
    %0 = vector.load %arg1[%c0, %c0_0] : memref<64x16xbf16, #tpu.memory_space<vmem>>, vector<64x16xbf16>
    %c0_1 = arith.constant 0 : index
    %c0_2 = arith.constant 0 : index
    %1 = vector.load %arg2[%c0_1, %c0_2] : memref<8x16xbf16, #tpu.memory_space<vmem>>, vector<8x16xbf16>
    %c0_3 = arith.constant 0 : index
    %c0_4 = arith.constant 0 : index
    %2 = vector.load %arg8[%c0_3, %c0_4] : memref<3x32xf32, #tpu.memory_space<vmem>>, vector<3x32xf32>
    %c0_5 = arith.constant 0 : index
    %c0_6 = arith.constant 0 : index
    %3 = vector.load %arg3[%c0_5, %c0_6] : memref<16x32xbf16, #tpu.memory_space<vmem>>, vector<16x32xbf16>
    %cst = arith.constant dense<0.000000e+00> : vector<64x32xf32>
    %4 = tpu.matmul %0, %3, %cst {dimension_numbers = #tpu.dot_dimension_numbers<[1], [0], [0], [1], [0, 0, 1, 1], [], []>} : vector<64x16xbf16>, vector<16x32xbf16>, vector<64x32xf32> -> vector<64x32xf32>
    %5 = vector.extract_strided_slice %2 {offsets = [0, 0], sizes = [1, 32], strides = [1, 1]} : vector<3x32xf32> to vector<1x32xf32>
    %6 = vector.shape_cast %5 : vector<1x32xf32> to vector<32xf32>
    %7 = vector.shape_cast %6 : vector<32xf32> to vector<1x32xf32>
    %8 = vector.broadcast %7 : vector<1x32xf32> to vector<64x32xf32>
    %9 = arith.addf %4, %8 : vector<64x32xf32>
    %cst_7 = arith.constant 0.000000e+00 : f32
    %10 = vector.broadcast %cst_7 : f32 to vector<64x32xf32>
    %11 = arith.maximumf %9, %10 : vector<64x32xf32>
    %12 = vector.shape_cast %11 : vector<64x32xf32> to vector<8x8x32xf32>
    %cst_8 = arith.constant dense<0.000000e+00> : vector<8x32xf32>
    %13 = vector.multi_reduction <add>, %12, %cst_8 [1] : vector<8x8x32xf32> to vector<8x32xf32>
    %14 = vector.extract_strided_slice %2 {offsets = [2, 0], sizes = [1, 32], strides = [1, 1]} : vector<3x32xf32> to vector<1x32xf32>
    %15 = vector.shape_cast %14 : vector<1x32xf32> to vector<32xf32>
    %16 = vector.shape_cast %15 : vector<32xf32> to vector<1x32xf32>
    %17 = vector.broadcast %16 : vector<1x32xf32> to vector<8x32xf32>
    %18 = arith.subf %13, %17 : vector<8x32xf32>
    %19 = arith.truncf %18 : vector<8x32xf32> to vector<8x32xbf16>
    %c0_9 = arith.constant 0 : index
    %c0_10 = arith.constant 0 : index
    %20 = vector.load %arg4[%c0_9, %c0_10] : memref<32x32xbf16, #tpu.memory_space<vmem>>, vector<32x32xbf16>
    %cst_11 = arith.constant dense<0.000000e+00> : vector<8x32xf32>
    %21 = tpu.matmul %19, %20, %cst_11 {dimension_numbers = #tpu.dot_dimension_numbers<[1], [0], [0], [1], [0, 0, 1, 1], [], []>} : vector<8x32xbf16>, vector<32x32xbf16>, vector<8x32xf32> -> vector<8x32xf32>
    %22 = vector.extract_strided_slice %2 {offsets = [1, 0], sizes = [1, 32], strides = [1, 1]} : vector<3x32xf32> to vector<1x32xf32>
    %23 = vector.shape_cast %22 : vector<1x32xf32> to vector<32xf32>
    %24 = vector.shape_cast %23 : vector<32xf32> to vector<1x32xf32>
    %25 = vector.broadcast %24 : vector<1x32xf32> to vector<8x32xf32>
    %26 = arith.addf %21, %25 : vector<8x32xf32>
    %cst_12 = arith.constant 0.000000e+00 : f32
    %27 = vector.broadcast %cst_12 : f32 to vector<8x32xf32>
    %28 = arith.maximumf %26, %27 : vector<8x32xf32>
    %c0_13 = arith.constant 0 : index
    %c0_14 = arith.constant 0 : index
    %29 = vector.load %arg5[%c0_13, %c0_14] : memref<16x32xbf16, #tpu.memory_space<vmem>>, vector<16x32xbf16>
    %cst_15 = arith.constant dense<0.000000e+00> : vector<8x32xf32>
    %30 = tpu.matmul %1, %29, %cst_15 {dimension_numbers = #tpu.dot_dimension_numbers<[1], [0], [0], [1], [0, 0, 1, 1], [], []>} : vector<8x16xbf16>, vector<16x32xbf16>, vector<8x32xf32> -> vector<8x32xf32>
    %31 = arith.truncf %28 : vector<8x32xf32> to vector<8x32xbf16>
    %c0_16 = arith.constant 0 : index
    %c0_17 = arith.constant 0 : index
    %32 = vector.load %arg6[%c0_16, %c0_17] : memref<32x32xbf16, #tpu.memory_space<vmem>>, vector<32x32xbf16>
    %cst_18 = arith.constant dense<0.000000e+00> : vector<8x32xf32>
    %33 = tpu.matmul %31, %32, %cst_18 {dimension_numbers = #tpu.dot_dimension_numbers<[1], [0], [0], [1], [0, 0, 1, 1], [], []>} : vector<8x32xbf16>, vector<32x32xbf16>, vector<8x32xf32> -> vector<8x32xf32>
    %34 = arith.addf %30, %33 : vector<8x32xf32>
    %c0_19 = arith.constant 0 : index
    %c0_20 = arith.constant 0 : index
    %35 = vector.load %arg9[%c0_19, %c0_20] : memref<1x32xf32, #tpu.memory_space<vmem>>, vector<1x32xf32>
    %36 = vector.broadcast %35 : vector<1x32xf32> to vector<8x32xf32>
    %37 = arith.addf %34, %36 : vector<8x32xf32>
    %cst_21 = arith.constant 0.000000e+00 : f32
    %38 = vector.broadcast %cst_21 : f32 to vector<8x32xf32>
    %39 = arith.maximumf %37, %38 : vector<8x32xf32>
    %40 = arith.truncf %39 : vector<8x32xf32> to vector<8x32xbf16>
    %c0_22 = arith.constant 0 : index
    %c0_23 = arith.constant 0 : index
    %41 = vector.load %arg7[%c0_22, %c0_23] : memref<32x128xbf16, #tpu.memory_space<vmem>>, vector<32x128xbf16>
    %cst_24 = arith.constant dense<0.000000e+00> : vector<8x128xf32>
    %42 = tpu.matmul %40, %41, %cst_24 {dimension_numbers = #tpu.dot_dimension_numbers<[1], [0], [0], [1], [0, 0, 1, 1], [], []>} : vector<8x32xbf16>, vector<32x128xbf16>, vector<8x128xf32> -> vector<8x128xf32>
    %c0_25 = arith.constant 0 : index
    %c0_26 = arith.constant 0 : index
    %43 = vector.load %arg10[%c0_25, %c0_26] : memref<1x128xf32, #tpu.memory_space<vmem>>, vector<1x128xf32>
    %44 = vector.broadcast %43 : vector<1x128xf32> to vector<8x128xf32>
    %45 = arith.addf %42, %44 : vector<8x128xf32>
    %cst_27 = arith.constant dense<0xFF800000> : vector<8xf32>
    %46 = vector.multi_reduction <maximumf>, %45, %cst_27 [1] : vector<8x128xf32> to vector<8xf32>
    %47 = vector.shape_cast %46 : vector<8xf32> to vector<8x1xf32>
    %48 = vector.broadcast %47 : vector<8x1xf32> to vector<8x128xf32>
    %49 = arith.subf %45, %48 : vector<8x128xf32>
    %50 = math.exp %49 : vector<8x128xf32>
    %cst_28 = arith.constant dense<0.000000e+00> : vector<8xf32>
    %51 = vector.multi_reduction <add>, %50, %cst_28 [1] : vector<8x128xf32> to vector<8xf32>
    %52 = vector.shape_cast %51 : vector<8xf32> to vector<8x1xf32>
    %53 = vector.broadcast %52 : vector<8x1xf32> to vector<8x128xf32>
    %54 = arith.divf %50, %53 : vector<8x128xf32>
    %c0_29 = arith.constant 0 : index
    %c0_30 = arith.constant 0 : index
    %55 = vector.load %arg11[%c0_29, %c0_30] : memref<8x128xf32, #tpu.memory_space<vmem>>, vector<8x128xf32>
    tpu.vector_store %arg11[%c0_29, %c0_30], %54 {strides = array<i32>} : memref<8x128xf32, #tpu.memory_space<vmem>>, vector<8x128xf32>,
    return
  }
  func.func @transform_0(%arg0: i32) -> (i32, i32) {
    %c0_i32 = arith.constant 0 : i32
    %c0_i32_0 = arith.constant 0 : i32
    return %arg0, %c0_i32 : i32, i32
  }
  func.func @transform_1(%arg0: i32) -> (i32, i32) {
    %c0_i32 = arith.constant 0 : i32
    %c0_i32_0 = arith.constant 0 : i32
    return %arg0, %c0_i32 : i32, i32
  }
  func.func @transform_2(%arg0: i32) -> (i32, i32) {
    %c0_i32 = arith.constant 0 : i32
    %c0_i32_0 = arith.constant 0 : i32
    %c0_i32_1 = arith.constant 0 : i32
    return %c0_i32, %c0_i32_0 : i32, i32
  }
  func.func @transform_3(%arg0: i32) -> (i32, i32) {
    %c0_i32 = arith.constant 0 : i32
    %c0_i32_0 = arith.constant 0 : i32
    %c0_i32_1 = arith.constant 0 : i32
    return %c0_i32, %c0_i32_0 : i32, i32
  }
  func.func @transform_4(%arg0: i32) -> (i32, i32) {
    %c0_i32 = arith.constant 0 : i32
    %c0_i32_0 = arith.constant 0 : i32
    %c0_i32_1 = arith.constant 0 : i32
    return %c0_i32, %c0_i32_0 : i32, i32
  }
  func.func @transform_5(%arg0: i32) -> (i32, i32) {
    %c0_i32 = arith.constant 0 : i32
    %c0_i32_0 = arith.constant 0 : i32
    %c0_i32_1 = arith.constant 0 : i32
    return %c0_i32, %c0_i32_0 : i32, i32
  }
  func.func @transform_6(%arg0: i32) -> (i32, i32) {
    %c0_i32 = arith.constant 0 : i32
    %c0_i32_0 = arith.constant 0 : i32
    %c0_i32_1 = arith.constant 0 : i32
    return %c0_i32, %c0_i32_0 : i32, i32
  }
  func.func @transform_7(%arg0: i32) -> (i32, i32) {
    %c0_i32 = arith.constant 0 : i32
    %c0_i32_0 = arith.constant 0 : i32
    %c0_i32_1 = arith.constant 0 : i32
    return %c0_i32, %c0_i32_0 : i32, i32
  }
  func.func @transform_8(%arg0: i32) -> (i32, i32) {
    %c0_i32 = arith.constant 0 : i32
    %c0_i32_0 = arith.constant 0 : i32
    %c0_i32_1 = arith.constant 0 : i32
    return %c0_i32, %c0_i32_0 : i32, i32
  }
  func.func @transform_9(%arg0: i32) -> (i32, i32) {
    %c0_i32 = arith.constant 0 : i32
    %c0_i32_0 = arith.constant 0 : i32
    %c0_i32_1 = arith.constant 0 : i32
    return %c0_i32, %c0_i32_0 : i32, i32
  }
  func.func @transform_10(%arg0: i32) -> (i32, i32) {
    %c0_i32 = arith.constant 0 : i32
    %c0_i32_0 = arith.constant 0 : i32
    return %arg0, %c0_i32 : i32, i32
  }
}

module attributes {stable_mosaic.version = 11 : i64} {
  func.func @_policy_kernel(%arg0: i32, %arg1: memref<64x16xbf16, #tpu.memory_space<vmem>>, %arg2: memref<8x16xbf16, #tpu.memory_space<vmem>>, %arg3: memref<16x32xbf16, #tpu.memory_space<vmem>>, %arg4: memref<32x32xbf16, #tpu.memory_space<vmem>>, %arg5: memref<16x32xbf16, #tpu.memory_space<vmem>>, %arg6: memref<32x32xbf16, #tpu.memory_space<vmem>>, %arg7: memref<32x128xbf16, #tpu.memory_space<vmem>>, %arg8: memref<3x32xf32, #tpu.memory_space<vmem>>, %arg9: memref<1x32xf32, #tpu.memory_space<vmem>>, %arg10: memref<1x128xf32, #tpu.memory_space<vmem>>, %arg11: memref<8x128xf32, #tpu.memory_space<vmem>>) attributes {dimension_semantics = [#tpu.dimension_semantics<parallel>], iteration_bounds = array<i64: 2>, scalar_prefetch = 0 : i64, scratch_operands = 0 : i64, tpu.core_type = #tpu.core_type<tc>, window_params = [{transform_indices = @transform_0, window_bounds = array<i64: 64, 16>}, {transform_indices = @transform_1, window_bounds = array<i64: 8, 16>}, {pipeline_mode = #tpu.pipeline_mode<synchronous>, transform_indices = @transform_2, window_bounds = array<i64: 16, 32>}, {pipeline_mode = #tpu.pipeline_mode<synchronous>, transform_indices = @transform_3, window_bounds = array<i64: 32, 32>}, {pipeline_mode = #tpu.pipeline_mode<synchronous>, transform_indices = @transform_4, window_bounds = array<i64: 16, 32>}, {pipeline_mode = #tpu.pipeline_mode<synchronous>, transform_indices = @transform_5, window_bounds = array<i64: 32, 32>}, {pipeline_mode = #tpu.pipeline_mode<synchronous>, transform_indices = @transform_6, window_bounds = array<i64: 32, 128>}, {pipeline_mode = #tpu.pipeline_mode<synchronous>, transform_indices = @transform_7, window_bounds = array<i64: 3, 32>}, {pipeline_mode = #tpu.pipeline_mode<synchronous>, transform_indices = @transform_8, window_bounds = array<i64: 1, 32>}, {pipeline_mode = #tpu.pipeline_mode<synchronous>, transform_indices = @transform_9, window_bounds = array<i64: 1, 128>}, {transform_indices = @transform_10, window_bounds = array<i64: 8, 128>}]} {
    %c0 = arith.constant 0 : index
    %c0_0 = arith.constant 0 : index
    %0 = vector.load %arg1[%c0, %c0_0] : memref<64x16xbf16, #tpu.memory_space<vmem>>, vector<64x16xbf16>
    %c0_1 = arith.constant 0 : index
    %c0_2 = arith.constant 0 : index
    %1 = vector.load %arg2[%c0_1, %c0_2] : memref<8x16xbf16, #tpu.memory_space<vmem>>, vector<8x16xbf16>
    %c0_3 = arith.constant 0 : index
    %c0_4 = arith.constant 0 : index
    %2 = vector.load %arg8[%c0_3, %c0_4] : memref<3x32xf32, #tpu.memory_space<vmem>>, vector<3x32xf32>
    %c0_5 = arith.constant 0 : index
    %c0_6 = arith.constant 0 : index
    %3 = vector.load %arg3[%c0_5, %c0_6] : memref<16x32xbf16, #tpu.memory_space<vmem>>, vector<16x32xbf16>
    %cst = arith.constant dense<0.000000e+00> : vector<64x32xf32>
    %4 = tpu.matmul %0, %3, %cst {dimension_numbers = #tpu.dot_dimension_numbers<[1], [0], [0], [1], [0, 0, 1, 1], [], []>} : vector<64x16xbf16>, vector<16x32xbf16>, vector<64x32xf32> -> vector<64x32xf32>
    %5 = vector.extract_strided_slice %2 {offsets = [0, 0], sizes = [1, 32], strides = [1, 1]} : vector<3x32xf32> to vector<1x32xf32>
    %6 = vector.shape_cast %5 : vector<1x32xf32> to vector<32xf32>
    %7 = vector.shape_cast %6 : vector<32xf32> to vector<1x32xf32>
    %8 = vector.broadcast %7 : vector<1x32xf32> to vector<64x32xf32>
    %9 = arith.addf %4, %8 : vector<64x32xf32>
    %cst_7 = arith.constant 0.000000e+00 : f32
    %10 = vector.broadcast %cst_7 : f32 to vector<64x32xf32>
    %11 = arith.maximumf %9, %10 : vector<64x32xf32>
    %12 = vector.shape_cast %11 : vector<64x32xf32> to vector<8x8x32xf32>
    %cst_8 = arith.constant dense<0.000000e+00> : vector<8x32xf32>
    %13 = vector.multi_reduction <add>, %12, %cst_8 [1] : vector<8x8x32xf32> to vector<8x32xf32>
    %14 = vector.extract_strided_slice %2 {offsets = [2, 0], sizes = [1, 32], strides = [1, 1]} : vector<3x32xf32> to vector<1x32xf32>
    %15 = vector.shape_cast %14 : vector<1x32xf32> to vector<32xf32>
    %16 = vector.shape_cast %15 : vector<32xf32> to vector<1x32xf32>
    %17 = vector.broadcast %16 : vector<1x32xf32> to vector<8x32xf32>
    %18 = arith.subf %13, %17 : vector<8x32xf32>
    %19 = arith.truncf %18 : vector<8x32xf32> to vector<8x32xbf16>
    %c0_9 = arith.constant 0 : index
    %c0_10 = arith.constant 0 : index
    %20 = vector.load %arg4[%c0_9, %c0_10] : memref<32x32xbf16, #tpu.memory_space<vmem>>, vector<32x32xbf16>
    %cst_11 = arith.constant dense<0.000000e+00> : vector<8x32xf32>
    %21 = tpu.matmul %19, %20, %cst_11 {dimension_numbers = #tpu.dot_dimension_numbers<[1], [0], [0], [1], [0, 0, 1, 1], [], []>} : vector<8x32xbf16>, vector<32x32xbf16>, vector<8x32xf32> -> vector<8x32xf32>
    %22 = vector.extract_strided_slice %2 {offsets = [1, 0], sizes = [1, 32], strides = [1, 1]} : vector<3x32xf32> to vector<1x32xf32>
    %23 = vector.shape_cast %22 : vector<1x32xf32> to vector<32xf32>
    %24 = vector.shape_cast %23 : vector<32xf32> to vector<1x32xf32>
    %25 = vector.broadcast %24 : vector<1x32xf32> to vector<8x32xf32>
    %26 = arith.addf %21, %25 : vector<8x32xf32>
    %cst_12 = arith.constant 0.000000e+00 : f32
    %27 = vector.broadcast %cst_12 : f32 to vector<8x32xf32>
    %28 = arith.maximumf %26, %27 : vector<8x32xf32>
    %c0_13 = arith.constant 0 : index
    %c0_14 = arith.constant 0 : index
    %29 = vector.load %arg5[%c0_13, %c0_14] : memref<16x32xbf16, #tpu.memory_space<vmem>>, vector<16x32xbf16>
    %cst_15 = arith.constant dense<0.000000e+00> : vector<8x32xf32>
    %30 = tpu.matmul %1, %29, %cst_15 {dimension_numbers = #tpu.dot_dimension_numbers<[1], [0], [0], [1], [0, 0, 1, 1], [], []>} : vector<8x16xbf16>, vector<16x32xbf16>, vector<8x32xf32> -> vector<8x32xf32>
    %31 = arith.truncf %28 : vector<8x32xf32> to vector<8x32xbf16>
    %c0_16 = arith.constant 0 : index
    %c0_17 = arith.constant 0 : index
    %32 = vector.load %arg6[%c0_16, %c0_17] : memref<32x32xbf16, #tpu.memory_space<vmem>>, vector<32x32xbf16>
    %cst_18 = arith.constant dense<0.000000e+00> : vector<8x32xf32>
    %33 = tpu.matmul %31, %32, %cst_18 {dimension_numbers = #tpu.dot_dimension_numbers<[1], [0], [0], [1], [0, 0, 1, 1], [], []>} : vector<8x32xbf16>, vector<32x32xbf16>, vector<8x32xf32> -> vector<8x32xf32>
    %34 = arith.addf %30, %33 : vector<8x32xf32>
    %c0_19 = arith.constant 0 : index
    %c0_20 = arith.constant 0 : index
    %35 = vector.load %arg9[%c0_19, %c0_20] : memref<1x32xf32, #tpu.memory_space<vmem>>, vector<1x32xf32>
    %36 = vector.broadcast %35 : vector<1x32xf32> to vector<8x32xf32>
    %37 = arith.addf %34, %36 : vector<8x32xf32>
    %cst_21 = arith.constant 0.000000e+00 : f32
    %38 = vector.broadcast %cst_21 : f32 to vector<8x32xf32>
    %39 = arith.maximumf %37, %38 : vector<8x32xf32>
    %40 = arith.truncf %39 : vector<8x32xf32> to vector<8x32xbf16>
    %c0_22 = arith.constant 0 : index
    %c0_23 = arith.constant 0 : index
    %41 = vector.load %arg7[%c0_22, %c0_23] : memref<32x128xbf16, #tpu.memory_space<vmem>>, vector<32x128xbf16>
    %cst_24 = arith.constant dense<0.000000e+00> : vector<8x128xf32>
    %42 = tpu.matmul %40, %41, %cst_24 {dimension_numbers = #tpu.dot_dimension_numbers<[1], [0], [0], [1], [0, 0, 1, 1], [], []>} : vector<8x32xbf16>, vector<32x128xbf16>, vector<8x128xf32> -> vector<8x128xf32>
    %c0_25 = arith.constant 0 : index
    %c0_26 = arith.constant 0 : index
    %43 = vector.load %arg10[%c0_25, %c0_26] : memref<1x128xf32, #tpu.memory_space<vmem>>, vector<1x128xf32>
    %44 = vector.broadcast %43 : vector<1x128xf32> to vector<8x128xf32>
    %45 = arith.addf %42, %44 : vector<8x128xf32>
    %cst_27 = arith.constant dense<0xFF800000> : vector<8xf32>
    %46 = vector.multi_reduction <maximumf>, %45, %cst_27 [1] : vector<8x128xf32> to vector<8xf32>
    %47 = vector.shape_cast %46 : vector<8xf32> to vector<8x1xf32>
    %48 = vector.broadcast %47 : vector<8x1xf32> to vector<8x128xf32>
    %49 = arith.subf %45, %48 : vector<8x128xf32>
    %50 = math.exp %49 : vector<8x128xf32>
    %cst_28 = arith.constant dense<0.000000e+00> : vector<8xf32>
    %51 = vector.multi_reduction <add>, %50, %cst_28 [1] : vector<8x128xf32> to vector<8xf32>
    %52 = vector.shape_cast %51 : vector<8xf32> to vector<8x1xf32>
    %53 = vector.broadcast %52 : vector<8x1xf32> to vector<8x128xf32>
    %54 = arith.divf %50, %53 : vector<8x128xf32>
    %c0_29 = arith.constant 0 : index
    %c0_30 = arith.constant 0 : index
    %55 = vector.load %arg11[%c0_29, %c0_30] : memref<8x128xf32, #tpu.memory_space<vmem>>, vector<8x128xf32>
    tpu.vector_store %arg11[%c0_29, %c0_30], %54 {strides = array<i32>} : memref<8x128xf32, #tpu.memory_space<vmem>>, vector<8x128xf32>,
    return
  }
  func.func @transform_0(%arg0: i32) -> (i32, i32) {
    %c0_i32 = arith.constant 0 : i32
    %c0_i32_0 = arith.constant 0 : i32
    return %arg0, %c0_i32 : i32, i32
  }
  func.func @transform_1(%arg0: i32) -> (i32, i32) {
    %c0_i32 = arith.constant 0 : i32
    %c0_i32_0 = arith.constant 0 : i32
    return %arg0, %c0_i32 : i32, i32
  }
  func.func @transform_2(%arg0: i32) -> (i32, i32) {
    %c0_i32 = arith.constant 0 : i32
    %c0_i32_0 = arith.constant 0 : i32
    %c0_i32_1 = arith.constant 0 : i32
    return %c0_i32, %c0_i32_0 : i32, i32
  }
  func.func @transform_3(%arg0: i32) -> (i32, i32) {
    %c0_i32 = arith.constant 0 : i32
    %c0_i32_0 = arith.constant 0 : i32
    %c0_i32_1 = arith.constant 0 : i32
    return %c0_i32, %c0_i32_0 : i32, i32
  }
  func.func @transform_4(%arg0: i32) -> (i32, i32) {
    %c0_i32 = arith.constant 0 : i32
    %c0_i32_0 = arith.constant 0 : i32
    %c0_i32_1 = arith.constant 0 : i32
    return %c0_i32, %c0_i32_0 : i32, i32
  }
  func.func @transform_5(%arg0: i32) -> (i32, i32) {
    %c0_i32 = arith.constant 0 : i32
    %c0_i32_0 = arith.constant 0 : i32
    %c0_i32_1 = arith.constant 0 : i32
    return %c0_i32, %c0_i32_0 : i32, i32
  }
  func.func @transform_6(%arg0: i32) -> (i32, i32) {
    %c0_i32 = arith.constant 0 : i32
    %c0_i32_0 = arith.constant 0 : i32
    %c0_i32_1 = arith.constant 0 : i32
    return %c0_i32, %c0_i32_0 : i32, i32
  }
  func.func @transform_7(%arg0: i32) -> (i32, i32) {
    %c0_i32 = arith.constant 0 : i32
    %c0_i32_0 = arith.constant 0 : i32
    %c0_i32_1 = arith.constant 0 : i32
    return %c0_i32, %c0_i32_0 : i32, i32
  }
  func.func @transform_8(%arg0: i32) -> (i32, i32) {
    %c0_i32 = arith.constant 0 : i32
    %c0_i32_0 = arith.constant 0 : i32
    %c0_i32_1 = arith.constant 0 : i32
    return %c0_i32, %c0_i32_0 : i32, i32
  }
  func.func @transform_9(%arg0: i32) -> (i32, i32) {
    %c0_i32 = arith.constant 0 : i32
    %c0_i32_0 = arith.constant 0 : i32
    %c0_i32_1 = arith.constant 0 : i32
    return %c0_i32, %c0_i32_0 : i32, i32
  }
  func.func @transform_10(%arg0: i32) -> (i32, i32) {
    %c0_i32 = arith.constant 0 : i32
    %c0_i32_0 = arith.constant 0 : i32
    return %arg0, %c0_i32 : i32, i32
  }
}

</mosaic_0001>

<bundles_post_ra>
// kernel: tpu_custom_call.1
= control target key start
LH: loop header
LB: loop body
LE: loop exit
PB: predicated region body
PF: predicated region fallthrough
CT: control target
= control target key end

     0   :  { %15 = vsyncpa [#allocation3], 0  ;;  %s1424_s0 = inlined_call_operand.vmem [shape: bf16[128,16], index: 0, kind: input, shape index: {}]   ;;  %s1425_s1 = inlined_call_operand.vmem [shape: bf16[16,16], index: 1, kind: input, shape index: {}]   ;;  %s1426_s2 = inlined_call_operand.vmem [shape: bf16[16,32], index: 2, kind: input, shape index: {}]   ;;  %s1427_s3 = inlined_call_operand.vmem [shape: bf16[32,32], index: 3, kind: input, shape index: {}]   ;;  %s1428_s4 = inlined_call_operand.vmem [shape: bf16[16,32], index: 4, kind: input, shape index: {}]   ;;  %s1429_s5 = inlined_call_operand.vmem [shape: bf16[32,32], index: 5, kind: input, shape index: {}]   ;;  %s1430_s6 = inlined_call_operand.vmem [shape: bf16[32,128], index: 6, kind: input, shape index: {}]   ;;  %s1431_s7 = inlined_call_operand.vmem [shape: f32[3,32], index: 7, kind: input, shape index: {}]   ;;  %s1432_s8 = inlined_call_operand.vmem [shape: f32[1,32], index: 8, kind: input, shape index: {}]   ;;  %s1433_s9 = inlined_call_operand.vmem [shape: f32[1,128], index: 9, kind: input, shape index: {}]   ;;  %s1434_s10 = inlined_call_operand.hbm [shape: f32[16,128], index: 10, kind: output, shape index: {}]  }
   0x1   :  { %17 = vsyncpa [#allocation3 + $0x1], 0  ;;  %s1236_s13 = smov 0   ;;  %s1238_s14 = smov 0  }
   0x2   :  { %s1240_s15 = smov 0   ;;  %s1242_s16 = smov 0  }
   0x3 LB: > { %s1257_s17 = sadd.s32 4294967295, %s1176_s16   ;;  %s967_s18 = sadd.s32 4294967294, %s1176_s16   ;;  %s1176_s16 = sphi %s1242_s16, %s1440_s16   ;;  %s1172_s15 = sphi %s1240_s15, %s1439_s15   ;;  %s1168_s14 = sphi %s1238_s14, %s1438_s14   ;;  %s1164_s13 = sphi %s1236_s13, %s1437_s13  }
   0x4   : > { %s1261_s19 = sadd.s32 1, %s1176_s16   ;;  %s250_s20 = sadd.s32 1, %s1172_s15 }
   0x5   : > { %s247_s21 = ssub.s32 %s1176_s16, %s1261_s19  ;;  %p260_p0 = scmp.ne.s32.totalorder %s1172_s15, %s1168_s14 }
   0x6   : > { %p248_p1 = scmp.eq.s32.totalorder %s247_s21, 0  ;;  %p261_p2 = scmp.eq.s32.totalorder %s1257_s17, 1 }
   0x7   : > { %p266_p3 = scmp.ne.s32.totalorder %s1168_s14, %s1164_s13  ;;  %p267_p4 = scmp.eq.s32.totalorder %s967_s18, 1 }
   0x8   : > { %s1272_s22 = scalar_select %p248_p1, %s1172_s15, %s250_s20  }
   0x9   : > { %p1274_p5 = por %p261_p2, %p260_p0  ;;  %p1278_p6 = por %p267_p4, %p266_p3 }
   0xa   : > { %p970_p7 = scmp.ge.s32.totalorder %s1176_s16, 1  ;;  %p325_p8 = scmp.lt.s32.totalorder %s1176_s16, 3 }
   0xc   : > { %p326_p9 = pnand %p970_p7, %p325_p8 }
   0xd   : > { %v1098_v0 = vld [vmem:[%s1426_s2] sm:$0xff] (!%p326_p9)   ;;  %s972_s27 = sshll.u32 (!%p326_p9), %s1257_s17, 3  ;;  %vm420_vm0 = vcmask (!%p326_p9), 130048   ;;  %v1178_v6 = vmov (!%p326_p9), 0.0   ;;  %v1104_v7 = vld [vmem:[%s1427_s3 + $0x8] sm:$0xff] (!%p326_p9)   ;;  %vm1179_vm1 = vmmov (!%p326_p9), 0   ;;  %v390_v9 = vlaneseq (!%p326_p9) }
   0xe   : > { %329 = sbr.rel (%p326_p9) target bundleno = 1261 (0x4ed), region = 60  ;;  %p368_p10 = scmp.lt.s32.totalorder (!%p326_p9), %s972_s27, 15  ;;  %1017 = vmatprep.subr.bf16.mxu0 (!%p326_p9), %v1098_v0  ;;  %v1103_v5 = vld [vmem:[%s1427_s3] sm:$0xff] (!%p326_p9)   ;;  %1027 = vmatprep.subr.bf16.mxu1 (!%p326_p9), %v1178_v6  ;;  %vm506_vm2 = vcmask (!%p326_p9), 261120   ;;  %vm608_vm3 = vcmask (!%p326_p9), 1041409   ;;  %vm611_vm4 = vcmask (!%p326_p9), 1042434  }
   0xf   : > { %1018 = vmatpush3.bf16.msra.mxu0 (!%p326_p9), %v1098_v0  ;;  %1028 = vmatpush3.bf16.msra.mxu1 (!%p326_p9), %v1103_v5  ;;  %v1105_v8 = vld [vmem:[%s1428_s4] sm:$0xff] (!%p326_p9)   ;;  %v1312_v10 = vshrl.u32 (!%p326_p9), %v390_v9, 7  ;;  %vm614_vm5 = vcmask (!%p326_p9), 1043459   ;;  %vm617_vm6 = vcmask (!%p326_p9), 1044484   ;;  %vm620_vm7 = vcmask (!%p326_p9), 1045509   ;;  %p373_p11 = scmp.lt.s32.totalorder (!%p326_p9), %s1257_s17, 1 }
  0x10   : > { %1043 = vmatprep.subr.bf16.mxu0 (!%p326_p9), %v1178_v6  ;;  %1029 = vmatprep.subr.bf16.mxu1 (!%p326_p9), %v1178_v6  ;;  %v1318_v12 = vld [vmem:[%s1431_s7] sm:$0x7] (!%p326_p9)  ;;  %vm623_vm8 = vcmask (!%p326_p9), 1046534   ;;  %vm626_vm9 = vcmask (!%p326_p9), 1047559   ;;  %s364_s21 = sand.u32 (!%p326_p9), 1, %s1168_s14  }
  0x11   : > { %1031 = vmatprep.mubr.msk.bf16.mxu1 (!%p326_p9), %vm1179_vm1, %v1178_v6  ;;  %v392_v11 = vsub.s32 (!%p326_p9), 0, %v1312_v10  ;;  %v565_v27 = vsub.s32 (!%p326_p9), 2, %v1312_v10  ;;  %s971_s25 = sshll.u32 (!%p326_p9), %s364_s21, 3 }
  0x13   : > { %1030 = vmatpush3.bf16.msra.mxu1 (!%p326_p9), %v1104_v7  ;;  %v393_v13 = vrot.slane (!%p326_p9), %v1318_v12, %v392_v11  ;;  %v1327_v41 = vrot.slane (!%p326_p9), %v1318_v12, %v565_v27 }
  0x14   : > { %1035 = vmatprep.subr.bf16.mxu1 (!%p326_p9), %v1178_v6 }
  0x15   : > { %s1442_s27 = smov (!%p368_p10, %s972_s27), 15 }
  0x16   : > { %s973_s28 = sshll.u32 %s1442_s27, 2  ;;  %s366_s27 = scalar_lea.vmem [#allocation2], %s971_s25 }
  0x17   : > { %s371_s11 = scalar_lea.vmem %s1424_s0, %s973_s28  ;;  %s896_s28 = sshll.u32 %s366_s27, 4  ;;  %s1384_s28 = int_to_ptr.vmem [resolvable:$true] %s896_s28 }
  0x18   : > { %v1099_v1 = vld [vmem:[%s371_s11] sm:$0xff]   ;;  %v1100_v2 = vld [vmem:[%s371_s11 + $0x8] sm:$0xff]   ;;  %v1101_v3 = vld [vmem:[%s371_s11 + $0x10] sm:$0xff]   ;;  %s1114_s18 = scalar_lea.vmem %s1384_s28, 128 }
  0x19   : > { %1019 = vmatprep.mubr.msk.bf16.mxu0 %vm420_vm0, %v1099_v1  ;;  %v1102_v4 = vld [vmem:[%s371_s11 + $0x18] sm:$0xff]   ;;  %s374_s11 = scalar_select %p373_p11, %s1257_s17, 1 }
  0x1a   : > { %1020 = vmatmul.mubr.msk.bf16.vlgmr.msra.gmra.mrb[0].mxu0 %vm420_vm0, %v1100_v2  ;;  %p1115_p12 = scmp.ne.s32.totalorder %s1384_s28, %s1114_s18 }
  0x1b   : > { %1023 = vmatprep.mubr.msk.bf16.mxu0 %vm420_vm0, %v1101_v3  ;;  %1044 = vmatpush3.bf16.msra.mxu0 %v1105_v8  ;;  %s974_s12 = sshll.u32 %s374_s11, 2 }
  0x1c   : > { %s376_s26 = scalar_lea.vmem %s1425_s1, %s974_s12  ;;  %s883_s12 = scalar_lea.sflag [#allocation3], %s364_s21 }
  0x1d   : > { %p1116_p13 = pnand %p1115_p12, %p1274_p5 }
  0x1f   : > { %p1117_p0 = pneg %p1116_p13 }
  0x22   : > { %1024 = vmatmul.mubr.msk.bf16.gmra.mrb[4].mxu0 %vm420_vm0, %v1102_v4 }
  0x23   : > { %1045 = vmatprep.mubr.msk.bf16.mxu0 %vm1179_vm1, %v1178_v6 }
  0xed   : > { %v1021_v14 = vpop.f32.mrb[0].mxu0 }
  0xee   : > { %v476_v15 = vadd.f32 %v1021_v14, %v393_v13  ;;  %v467_v16 = vpop.f32.mrb[1].mxu0 }
  0xef   : > { %v468_v17 = vadd.f32 %v467_v16, %v393_v13  ;;  %v1022_v18 = vpop.f32.mrb[2].mxu0 }
  0xf0   : > { %v500_v19 = vmax.f32 %v476_v15, 0.0  ;;  %v479_v20 = vadd.f32 %v1022_v18, %v393_v13  ;;  %v470_v21 = vpop.f32.mrb[3].mxu0 }
  0xf1   : > { %v498_v22 = vmax.f32 %v468_v17, 0.0  ;;  %v471_v23 = vadd.f32 %v470_v21, %v393_v13 }
  0xf2   : > { %v521_v24 = vsel %vm506_vm2, %v500_v19, 0.0  ;;  %v501_v25 = vmax.f32 %v479_v20, 0.0 }
  0xf3   : > { %v522_v26 = vrot.slane %v521_v24, 4  ;;  %v507_v28 = vsel %vm506_vm2, %v498_v22, 0.0  ;;  %v499_v29 = vmax.f32 %v471_v23, 0.0 }
  0xf4   : > { %v508_v30 = vrot.slane %v507_v28, 4  ;;  %v528_v31 = vsel %vm506_vm2, %v501_v25, 0.0 }
  0xf5   : > { %v523_v32 = vadd.f32 %v522_v26, %v521_v24  ;;  %v529_v33 = vrot.slane %v528_v31, 4  ;;  %v514_v34 = vsel %vm506_vm2, %v499_v29, 0.0  ;;  %v1025_v35 = vpop.f32.mrb[4].mxu0 }
  0xf6   : > { %v509_v36 = vadd.f32 %v508_v30, %v507_v28  ;;  %v515_v37 = vrot.slane %v514_v34, 4  ;;  %v492_v38 = vadd.f32 %v1025_v35, %v393_v13  ;;  %v483_v39 = vpop.f32.mrb[5].mxu0 }
  0xf7   : > { %v524_v40 = vrot.slane %v523_v32, 2  ;;  %v530_v42 = vadd.f32 %v529_v33, %v528_v31  ;;  %v484_v43 = vadd.f32 %v483_v39, %v393_v13  ;;  %v1026_v44 = vpop.f32.mrb[6].mxu0 }
  0xf8   : > { %v510_v45 = vrot.slane %v509_v36, 2  ;;  %v516_v46 = vadd.f32 %v515_v37, %v514_v34  ;;  %v504_v47 = vmax.f32 %v492_v38, 0.0  ;;  %v495_v48 = vadd.f32 %v1026_v44, %v393_v13  ;;  %v486_v49 = vpop.f32.mrb[7].mxu0 }
  0xf9   : > { %v525_v50 = vadd.f32 %v524_v40, %v523_v32  ;;  %v531_v51 = vrot.slane %v530_v42, 2  ;;  %v502_v52 = vmax.f32 %v484_v43, 0.0  ;;  %v487_v53 = vadd.f32 %v486_v49, %v393_v13 }
  0xfa   : > { %v511_v54 = vadd.f32 %v510_v45, %v509_v36  ;;  %v517_v55 = vrot.slane %v516_v46, 2  ;;  %v549_v56 = vsel %vm506_vm2, %v504_v47, 0.0  ;;  %v505_v57 = vmax.f32 %v495_v48, 0.0 }
  0xfb   : > { %v526_v58 = vrot.slane %v525_v50, 1  ;;  %v532_v59 = vadd.f32 %v531_v51, %v530_v42  ;;  %v550_v60 = vrot.slane %v549_v56, 4  ;;  %v535_v61 = vsel %vm506_vm2, %v502_v52, 0.0 }
  0xfc   : > { %v512_v62 = vrot.slane %v511_v54, 1  ;;  %v518_v63 = vadd.f32 %v517_v55, %v516_v46  ;;  %v536_v0 = vrot.slane %v535_v61, 4  ;;  %v556_v1 = vsel %vm506_vm2, %v505_v57, 0.0 }
  0xfd   : > { %v527_v2 = vadd.f32 %v526_v58, %v525_v50  ;;  %v533_v3 = vrot.slane %v532_v59, 1  ;;  %v551_v4 = vadd.f32 %v550_v60, %v549_v56  ;;  %v557_v5 = vrot.slane %v556_v1, 4 }
  0xfe   : > { %v513_v7 = vadd.f32 %v512_v62, %v511_v54  ;;  %v519_v8 = vrot.slane %v518_v63, 1  ;;  %v537_v9 = vadd.f32 %v536_v0, %v535_v61  ;;  %v503_v11 = vmax.f32 %v487_v53, 0.0 }
  0xff   : > { %v569_v13 = vsub.f32 %v527_v2, %v1327_v41  ;;  %v534_v14 = vadd.f32 %v533_v3, %v532_v59  ;;  %v552_v15 = vrot.slane %v551_v4, 2  ;;  %v558_v16 = vadd.f32 %v557_v5, %v556_v1 }
 0x100   : > { %v567_v17 = vsub.f32 %v513_v7, %v1327_v41  ;;  %v520_v18 = vadd.f32 %v519_v8, %v518_v63  ;;  %v538_v19 = vrot.slane %v537_v9, 2  ;;  %v542_v20 = vsel %vm506_vm2, %v503_v11, 0.0 }
 0x101   : > { %v577_v21 = vpack.c.bf16 %v569_v13, %v569_v13  ;;  %v570_v22 = vsub.f32 %v534_v14, %v1327_v41  ;;  %v553_v23 = vadd.f32 %v552_v15, %v551_v4  ;;  %v559_v24 = vrot.slane %v558_v16, 2  ;;  %v1107_v14 = vld [vmem:[%s1429_s5 + $0x8] sm:$0xff]   ;;  %v386_v15 = vld [vmem:[%s376_s26] sm:$0xf]  ;;  %s998_s26 = sshll.u32 %s1257_s17, 7  ;;  %s1180_s17 = smov [#allocation2]  }
 0x102   : > { %v568_v25 = vsub.f32 %v520_v18, %v1327_v41  ;;  %v539_v26 = vadd.f32 %v538_v19, %v537_v9  ;;  %v543_v27 = vrot.slane %v542_v20, 4  ;;  %v575_v31 = vpack.c.bf16 %v567_v17, %v567_v17  ;;  %1046 = vmatmul.mubr.msk.bf16.vlgmr.msra.gmra.mrb[8].mxu0 %vm420_vm0, %v386_v15  ;;  %s1382_s11 = scalar_lea.hbm %s1434_s10, %s998_s26  ;;  %s1118_s20 = sshll.u32 %s1180_s17, 4  ;;  %s1119_s20 = int_to_ptr.vmem [resolvable:$false] %s1118_s20 }
 0x103   : > { %v578_v28 = vpack.c.bf16 %v570_v22, %v570_v22  ;;  %v554_v29 = vrot.slane %v553_v23, 1  ;;  %v560_v30 = vadd.f32 %v559_v24, %v558_v16  ;;  %v601_v35 = vunpack.c.l.b16 %v577_v21  ;;  %s1120_s25 = scalar_lea.vmem %s1119_s20, 256  ;;  %p1121_p1 = scmp.lt.s32.totalorder %s1384_s28, %s1119_s20 }
 0x104   : > { %v576_v32 = vpack.c.bf16 %v568_v25, %v568_v25  ;;  %v540_v33 = vrot.slane %v539_v26, 1  ;;  %v544_v34 = vadd.f32 %v543_v27, %v542_v20  ;;  %v599_v44 = vunpack.c.l.b16 %v575_v31  ;;  %p1122_p2 = scmp.lt.s32.totalorder %s1120_s25, %s1114_s18 }
 0x105   : > { %v602_v36 = vunpack.c.l.b16 %v578_v28  ;;  %v555_v37 = vadd.f32 %v554_v29, %v553_v23  ;;  %v561_v38 = vrot.slane %v560_v30, 1  ;;  %v610_v48 = vrot.slane %v601_v35, 6 }
 0x106   : > { %v600_v39 = vunpack.c.l.b16 %v576_v32  ;;  %v541_v40 = vadd.f32 %v540_v33, %v539_v26  ;;  %v545_v42 = vrot.slane %v544_v34, 2  ;;  %v589_v16 = vsub.s32 1, %v1312_v10  ;;  %v1108_v10 = vld [vmem:[%s1430_s6] sm:$0xff]   ;;  %p1123_p3 = por %p1122_p2, %p1121_p1 }
 0x107   : > { %v562_v43 = vadd.f32 %v561_v38, %v560_v30  ;;  %v613_v49 = vrot.slane %v602_v36, 5  ;;  %v573_v50 = vsub.f32 %v555_v37, %v1327_v41  ;;  %v992_v30 = vld [vmem:[%s1432_s8] ss:$0 sm:$0xff] }
 0x108   : > { %v607_v45 = vrot.slane %v600_v39, 7  ;;  %v571_v46 = vsub.f32 %v541_v40, %v1327_v41  ;;  %v546_v47 = vadd.f32 %v545_v42, %v544_v34  ;;  %v590_v17 = vrot.slane %v1318_v12, %v589_v16  ;;  %v1109_v12 = vld [vmem:[%s1430_s6 + $0x8] sm:$0xff]   ;;  %p1124_p4 = pnand %p1123_p3, %p1117_p0 }
 0x109   : > { %v574_v53 = vsub.f32 %v562_v43, %v1327_v41  ;;  %v581_v59 = vpack.c.bf16 %v573_v50, %v573_v50 }
 0x10a   : > { %v609_v51 = vsel %vm608_vm3, %v607_v45, %v599_v44  ;;  %v579_v52 = vpack.c.bf16 %v571_v46, %v571_v46  ;;  %v547_v54 = vrot.slane %v546_v47, 1 }
 0x10b   : > { %v612_v55 = vsel %vm611_vm4, %v610_v48, %v609_v51  ;;  %v582_v61 = vpack.c.bf16 %v574_v53, %v574_v53  ;;  %v605_v1 = vunpack.c.l.b16 %v581_v59 }
 0x10c   : > { %v603_v56 = vunpack.c.l.b16 %v579_v52  ;;  %v548_v57 = vadd.f32 %v547_v54, %v546_v47  ;;  %v615_v58 = vsel %vm614_vm5, %v613_v49, %v612_v55 }
 0x10d   : > { %v606_v2 = vunpack.c.l.b16 %v582_v61  ;;  %v622_v5 = vrot.slane %v605_v1, 2 }
 0x10e   : > { %v616_v60 = vrot.slane %v603_v56, 4  ;;  %v572_v62 = vsub.f32 %v548_v57, %v1327_v41  ;;  %v1106_v41 = vld [vmem:[%s1429_s5] sm:$0xff]  }
 0x10f   : > { %v625_v7 = vrot.slane %v606_v2, 1 }
 0x110   : > { %v580_v63 = vpack.c.bf16 %v572_v62, %v572_v62  ;;  %v618_v0 = vsel %vm617_vm6, %v616_v60, %v615_v58 }
 0x112   : > { %v604_v3 = vunpack.c.l.b16 %v580_v63 }
 0x114   : > { %v619_v4 = vrot.slane %v604_v3, 3 }
 0x116   : > { %v621_v8 = vsel %vm620_vm7, %v619_v4, %v618_v0 }
 0x117   : > { %v624_v9 = vsel %vm623_vm8, %v622_v5, %v621_v8 }
 0x118   : > { %v627_v11 = vsel %vm626_vm9, %v625_v7, %v624_v9 }
 0x119   : > { %v628_v13 = vpack.c.b16 %v627_v11, %v627_v11 }
 0x11b   : > { %1032 = vmatmul.mubr.msk.bf16.vlgmr.msra.gmra.mrb[0].mxu1 %vm506_vm2, %v628_v13 }
 0x11c   : > { %1036 = vmatpush3.bf16.msra.mxu1 %v1106_v41  ;;  %1039 = vmatprep.mubr.msk.bf16.mxu1 %vm1179_vm1, %v1178_v6 }
 0x11d   : > { %1037 = vmatprep.subr.bf16.mxu1 %v1178_v6 }
 0x120   : > { %1038 = vmatpush3.bf16.msra.mxu1 %v1107_v14 }
 0x121   : > { %1049 = vmatprep.subr.bf16.mxu1 %v1178_v6 }
 0x1d5   : > { %v790_v25 = vpop.f32.mrb[8].mxu0 }
 0x1d6   : > { %v1047_v26 = vpop.f32.mrb[9].mxu0 }
 0x1d7   : > { %v793_v27 = vpop.f32.mrb[10].mxu0 }
 0x1d8   : > { %v1048_v28 = vpop.f32.mrb[11].mxu0 }
 0x1ee   : > { %v678_v18 = vpop.f32.mrb[0].mxu1 }
 0x1ef   : > { %v679_v19 = vadd.f32 %v678_v18, %v590_v17  ;;  %v1033_v20 = vpop.f32.mrb[1].mxu1 }
 0x1f0   : > { %v681_v21 = vpop.f32.mrb[2].mxu1 }
 0x1f1   : > { %v684_v22 = vmax.f32 %v679_v19, 0.0  ;;  %v1034_v23 = vpop.f32.mrb[3].mxu1 }
 0x1f3   : > { %v687_v24 = vpack.c.bf16 %v684_v22, %v684_v22 }
 0x1f5   : > { %1040 = vmatmul.mubr.msk.bf16.vlgmr.msra.gmra.mrb[4].mxu1 %vm506_vm2, %v687_v24 }
 0x1f6   : > { %1053 = vmatprep.mubr.msk.bf16.mxu1 %vm1179_vm1, %v1178_v6  ;;  %1050 = vmatpush3.bf16.msra.mxu1 %v1108_v10 }
 0x1f7   : > { %1051 = vmatprep.subr.bf16.mxu1 %v1178_v6  ;;  %v993_v6 = vld [vmem:[%s1433_s9] ss:$0 sm:$0xff] }
 0x1fa   : > { %1052 = vmatpush3.bf16.msra.mxu1 %v1109_v12 }
 0x2c8   : > { %v741_v29 = vpop.f32.mrb[4].mxu1 }
 0x2c9   : > { %v791_v31 = vadd.f32 %v790_v25, %v741_v29  ;;  %v1041_v32 = vpop.f32.mrb[5].mxu1 }
 0x2ca   : > { %v744_v33 = vpop.f32.mrb[6].mxu1 }
 0x2cb   : > { %v803_v34 = vadd.f32 %v992_v30, %v791_v31  ;;  %v1042_v35 = vpop.f32.mrb[7].mxu1 }
 0x2cd   : > { %v804_v36 = vmax.f32 %v803_v34, 0.0 }
 0x2cf   : > { %v805_v37 = vpack.c.bf16 %v804_v36, %v804_v36 }
 0x2d1   : > { %1054 = vmatmul.mubr.msk.bf16.vlgmr.msra.gmra.mrb[8].mxu1 %vm506_vm2, %v805_v37 }
 0x3a4   : > { %v866_v38 = vpop.f32.mrb[8].mxu1 }
 0x3a5   : > { %v867_v39 = vadd.f32 %v993_v6, %v866_v38  ;;  %v1055_v40 = vpop.f32.mrb[9].mxu1 }
 0x3a6   : > { %v869_v42 = vpop.f32.mrb[10].mxu1 }
 0x3a7   : > { %872 = vmax.xlane.f32.xlu0 %v867_v39  ;;  %v1056_v43 = vpop.f32.mrb[11].mxu1 }
 0x434   : > { %v873_v44 = vpop.xlane.xlu0 %872 }
 0x435   : > { %v874_v45 = vsub.f32 %v867_v39, %v873_v44 }
 0x437   : > { %v875_v46 = vmul.f32 1.442695, %v874_v45 }
 0x439   : > { %1110 = vpow2.f32 %v875_v46 }
 0x443   : > { %v1111_v47 = vpop.eup %1110 }
 0x444   : > { %877 = vadd.xlane.f32.xlu0 %v1111_v47 }
 0x4d1   : > { %v878_v48 = vpop.xlane.xlu0 %877 }
 0x4d2   : > { %1112 = vrcp.f32 %v878_v48 }
 0x4dc   : > { %v1113_v49 = vpop.eup %1112 }
 0x4dd   : > { %v880_v50 = vmul.f32 %v1113_v49, %v1111_v47 }
 0x4df   : > { %881 = vst [vmem:[%s366_s27] sm:$0xff] %v880_v50 }
 0x4e0   : > { %1127 = shalt.err (!%p1124_p4)
}
 0x4e1   : > { %s1128_s21 = scalar_lea.hbm %s1382_s11, 128  ;;  %s1132_s29 = scalar_lea.hbm %s1434_s10, 256 }
 0x4e2   : > { %p1129_p7 = scmp.ne.s32.totalorder %s1382_s11, %s1128_s21  ;;  %p1133_p10 = scmp.lt.u32.totalorder %s1382_s11, %s1434_s10 }
 0x4e3   : > { %p1134_p11 = scmp.lt.u32.totalorder %s1132_s29, %s1128_s21  ;;  %p1136_p13 = scmp.lt.u32.totalorder %s1128_s21, %s1382_s11 }
 0x4e4   : > { %p1130_p8 = pnand %p1129_p7, %p1274_p5 }
 0x4e5   : > { %p1135_p12 = por %p1134_p11, %p1133_p10 }
 0x4e6   : > { %p1131_p9 = pneg %p1130_p8 }
 0x4e7   : > { %p1137_p0 = por %p1136_p13, %p1135_p12 }
 0x4e9   : > { %p1138_p1 = pnand %p1137_p0, %p1131_p9 }
 0x4eb   : > { %1141 = shalt.err (!%p1138_p1)
}
 0x4ec   : > { %1057 = dma.vmem_to_hbm [thread:$0]  (%p1274_p5), %s1384_s28, 128, %s1382_s11, %s883_s12  }
 0x4ed PF: > { %p1063_p2 = scmp.ge.s32.totalorder %s1176_s16, 2  ;;  %s908_s18 = sand.u32 1, %s1164_s13  }
 0x4ee   : > { %s909_s20 = scalar_lea.sflag [#allocation3], %s908_s18 }
 0x4ef   : > { %p1060_p3 = pnand %p1063_p2, %p1278_p6 }
 0x4f1   : > { %1159 = dma.done.wait (!%p1060_p3), %s909_s20, 128  }
 0x4f2   : > { %1161 = vsyncadd (!%p1060_p3), %s909_s20, 4294967168  ;;  %p20_p4 = scmp.ge.s32.totalorder %s1261_s19, 4   ;;  %s1437_s13 = smov %s1168_s14 }
 0x4f3   : > { %s1438_s14 = smov %s1172_s15  ;;  %s1439_s15 = smov %s1272_s22 }
 0x4f4   : > { %s1440_s16 = smov %s1261_s19  ;;  %22 = sbr.rel (!%p20_p4) target bundleno = 3 (0x3), region = 98 }
 0x4fb   :  { %914 = vsyncpa [#allocation3], 1 }
 0x4fc   :  { %916 = vsyncpa [#allocation3 + $0x1], 1 }

// kernel: tpu_custom_call.1
= control target key start
LH: loop header
LB: loop body
LE: loop exit
PB: predicated region body
PF: predicated region fallthrough
CT: control target
= control target key end

     0   :  { %15 = vsyncpa [#allocation3], 0  ;;  %s1424_s0 = inlined_call_operand.vmem [shape: bf16[128,16], index: 0, kind: input, shape index: {}]   ;;  %s1425_s1 = inlined_call_operand.vmem [shape: bf16[16,16], index: 1, kind: input, shape index: {}]   ;;  %s1426_s2 = inlined_call_operand.vmem [shape: bf16[16,32], index: 2, kind: input, shape index: {}]   ;;  %s1427_s3 = inlined_call_operand.vmem [shape: bf16[32,32], index: 3, kind: input, shape index: {}]   ;;  %s1428_s4 = inlined_call_operand.vmem [shape: bf16[16,32], index: 4, kind: input, shape index: {}]   ;;  %s1429_s5 = inlined_call_operand.vmem [shape: bf16[32,32], index: 5, kind: input, shape index: {}]   ;;  %s1430_s6 = inlined_call_operand.vmem [shape: bf16[32,128], index: 6, kind: input, shape index: {}]   ;;  %s1431_s7 = inlined_call_operand.vmem [shape: f32[3,32], index: 7, kind: input, shape index: {}]   ;;  %s1432_s8 = inlined_call_operand.vmem [shape: f32[1,32], index: 8, kind: input, shape index: {}]   ;;  %s1433_s9 = inlined_call_operand.vmem [shape: f32[1,128], index: 9, kind: input, shape index: {}]   ;;  %s1434_s10 = inlined_call_operand.hbm [shape: f32[16,128], index: 10, kind: output, shape index: {}]  }
   0x1   :  { %17 = vsyncpa [#allocation3 + $0x1], 0  ;;  %s1236_s13 = smov 0   ;;  %s1238_s14 = smov 0  }
   0x2   :  { %s1240_s15 = smov 0   ;;  %s1242_s16 = smov 0  }
   0x3 LB: > { %s1257_s17 = sadd.s32 4294967295, %s1176_s16   ;;  %s967_s18 = sadd.s32 4294967294, %s1176_s16   ;;  %s1176_s16 = sphi %s1242_s16, %s1440_s16   ;;  %s1172_s15 = sphi %s1240_s15, %s1439_s15   ;;  %s1168_s14 = sphi %s1238_s14, %s1438_s14   ;;  %s1164_s13 = sphi %s1236_s13, %s1437_s13  }
   0x4   : > { %s1261_s19 = sadd.s32 1, %s1176_s16   ;;  %s250_s20 = sadd.s32 1, %s1172_s15 }
   0x5   : > { %s247_s21 = ssub.s32 %s1176_s16, %s1261_s19  ;;  %p260_p0 = scmp.ne.s32.totalorder %s1172_s15, %s1168_s14 }
   0x6   : > { %p248_p1 = scmp.eq.s32.totalorder %s247_s21, 0  ;;  %p261_p2 = scmp.eq.s32.totalorder %s1257_s17, 1 }
   0x7   : > { %p266_p3 = scmp.ne.s32.totalorder %s1168_s14, %s1164_s13  ;;  %p267_p4 = scmp.eq.s32.totalorder %s967_s18, 1 }
   0x8   : > { %s1272_s22 = scalar_select %p248_p1, %s1172_s15, %s250_s20  }
   0x9   : > { %p1274_p5 = por %p261_p2, %p260_p0  ;;  %p1278_p6 = por %p267_p4, %p266_p3 }
   0xa   : > { %p970_p7 = scmp.ge.s32.totalorder %s1176_s16, 1  ;;  %p325_p8 = scmp.lt.s32.totalorder %s1176_s16, 3 }
   0xc   : > { %p326_p9 = pnand %p970_p7, %p325_p8 }
   0xd   : > { %v1098_v0 = vld [vmem:[%s1426_s2] sm:$0xff] (!%p326_p9)   ;;  %s972_s27 = sshll.u32 (!%p326_p9), %s1257_s17, 3  ;;  %vm420_vm0 = vcmask (!%p326_p9), 130048   ;;  %v1178_v6 = vmov (!%p326_p9), 0.0   ;;  %v1104_v7 = vld [vmem:[%s1427_s3 + $0x8] sm:$0xff] (!%p326_p9)   ;;  %vm1179_vm1 = vmmov (!%p326_p9), 0   ;;  %v390_v9 = vlaneseq (!%p326_p9) }
   0xe   : > { %329 = sbr.rel (%p326_p9) target bundleno = 1261 (0x4ed), region = 60  ;;  %p368_p10 = scmp.lt.s32.totalorder (!%p326_p9), %s972_s27, 15  ;;  %1017 = vmatprep.subr.bf16.mxu0 (!%p326_p9), %v1098_v0  ;;  %v1103_v5 = vld [vmem:[%s1427_s3] sm:$0xff] (!%p326_p9)   ;;  %1027 = vmatprep.subr.bf16.mxu1 (!%p326_p9), %v1178_v6  ;;  %vm506_vm2 = vcmask (!%p326_p9), 261120   ;;  %vm608_vm3 = vcmask (!%p326_p9), 1041409   ;;  %vm611_vm4 = vcmask (!%p326_p9), 1042434  }
   0xf   : > { %1018 = vmatpush3.bf16.msra.mxu0 (!%p326_p9), %v1098_v0  ;;  %1028 = vmatpush3.bf16.msra.mxu1 (!%p326_p9), %v1103_v5  ;;  %v1105_v8 = vld [vmem:[%s1428_s4] sm:$0xff] (!%p326_p9)   ;;  %v1312_v10 = vshrl.u32 (!%p326_p9), %v390_v9, 7  ;;  %vm614_vm5 = vcmask (!%p326_p9), 1043459   ;;  %vm617_vm6 = vcmask (!%p326_p9), 1044484   ;;  %vm620_vm7 = vcmask (!%p326_p9), 1045509   ;;  %p373_p11 = scmp.lt.s32.totalorder (!%p326_p9), %s1257_s17, 1 }
  0x10   : > { %1043 = vmatprep.subr.bf16.mxu0 (!%p326_p9), %v1178_v6  ;;  %1029 = vmatprep.subr.bf16.mxu1 (!%p326_p9), %v1178_v6  ;;  %v1318_v12 = vld [vmem:[%s1431_s7] sm:$0x7] (!%p326_p9)  ;;  %vm623_vm8 = vcmask (!%p326_p9), 1046534   ;;  %vm626_vm9 = vcmask (!%p326_p9), 1047559   ;;  %s364_s21 = sand.u32 (!%p326_p9), 1, %s1168_s14  }
  0x11   : > { %1031 = vmatprep.mubr.msk.bf16.mxu1 (!%p326_p9), %vm1179_vm1, %v1178_v6  ;;  %v392_v11 = vsub.s32 (!%p326_p9), 0, %v1312_v10  ;;  %v565_v27 = vsub.s32 (!%p326_p9), 2, %v1312_v10  ;;  %s971_s25 = sshll.u32 (!%p326_p9), %s364_s21, 3 }
  0x13   : > { %1030 = vmatpush3.bf16.msra.mxu1 (!%p326_p9), %v1104_v7  ;;  %v393_v13 = vrot.slane (!%p326_p9), %v1318_v12, %v392_v11  ;;  %v1327_v41 = vrot.slane (!%p326_p9), %v1318_v12, %v565_v27 }
  0x14   : > { %1035 = vmatprep.subr.bf16.mxu1 (!%p326_p9), %v1178_v6 }
  0x15   : > { %s1442_s27 = smov (!%p368_p10, %s972_s27), 15 }
  0x16   : > { %s973_s28 = sshll.u32 %s1442_s27, 2  ;;  %s366_s27 = scalar_lea.vmem [#allocation2], %s971_s25 }
  0x17   : > { %s371_s11 = scalar_lea.vmem %s1424_s0, %s973_s28  ;;  %s896_s28 = sshll.u32 %s366_s27, 4  ;;  %s1384_s28 = int_to_ptr.vmem [resolvable:$true] %s896_s28 }
  0x18   : > { %v1099_v1 = vld [vmem:[%s371_s11] sm:$0xff]   ;;  %v1100_v2 = vld [vmem:[%s371_s11 + $0x8] sm:$0xff]   ;;  %v1101_v3 = vld [vmem:[%s371_s11 + $0x10] sm:$0xff]   ;;  %s1114_s18 = scalar_lea.vmem %s1384_s28, 128 }
  0x19   : > { %1019 = vmatprep.mubr.msk.bf16.mxu0 %vm420_vm0, %v1099_v1  ;;  %v1102_v4 = vld [vmem:[%s371_s11 + $0x18] sm:$0xff]   ;;  %s374_s11 = scalar_select %p373_p11, %s1257_s17, 1 }
  0x1a   : > { %1020 = vmatmul.mubr.msk.bf16.vlgmr.msra.gmra.mrb[0].mxu0 %vm420_vm0, %v1100_v2  ;;  %p1115_p12 = scmp.ne.s32.totalorder %s1384_s28, %s1114_s18 }
  0x1b   : > { %1023 = vmatprep.mubr.msk.bf16.mxu0 %vm420_vm0, %v1101_v3  ;;  %1044 = vmatpush3.bf16.msra.mxu0 %v1105_v8  ;;  %s974_s12 = sshll.u32 %s374_s11, 2 }
  0x1c   : > { %s376_s26 = scalar_lea.vmem %s1425_s1, %s974_s12  ;;  %s883_s12 = scalar_lea.sflag [#allocation3], %s364_s21 }
  0x1d   : > { %p1116_p13 = pnand %p1115_p12, %p1274_p5 }
  0x1f   : > { %p1117_p0 = pneg %p1116_p13 }
  0x22   : > { %1024 = vmatmul.mubr.msk.bf16.gmra.mrb[4].mxu0 %vm420_vm0, %v1102_v4 }
  0x23   : > { %1045 = vmatprep.mubr.msk.bf16.mxu0 %vm1179_vm1, %v1178_v6 }
  0xed   : > { %v1021_v14 = vpop.f32.mrb[0].mxu0 }
  0xee   : > { %v476_v15 = vadd.f32 %v1021_v14, %v393_v13  ;;  %v467_v16 = vpop.f32.mrb[1].mxu0 }
  0xef   : > { %v468_v17 = vadd.f32 %v467_v16, %v393_v13  ;;  %v1022_v18 = vpop.f32.mrb[2].mxu0 }
  0xf0   : > { %v500_v19 = vmax.f32 %v476_v15, 0.0  ;;  %v479_v20 = vadd.f32 %v1022_v18, %v393_v13  ;;  %v470_v21 = vpop.f32.mrb[3].mxu0 }
  0xf1   : > { %v498_v22 = vmax.f32 %v468_v17, 0.0  ;;  %v471_v23 = vadd.f32 %v470_v21, %v393_v13 }
  0xf2   : > { %v521_v24 = vsel %vm506_vm2, %v500_v19, 0.0  ;;  %v501_v25 = vmax.f32 %v479_v20, 0.0 }
  0xf3   : > { %v522_v26 = vrot.slane %v521_v24, 4  ;;  %v507_v28 = vsel %vm506_vm2, %v498_v22, 0.0  ;;  %v499_v29 = vmax.f32 %v471_v23, 0.0 }
  0xf4   : > { %v508_v30 = vrot.slane %v507_v28, 4  ;;  %v528_v31 = vsel %vm506_vm2, %v501_v25, 0.0 }
  0xf5   : > { %v523_v32 = vadd.f32 %v522_v26, %v521_v24  ;;  %v529_v33 = vrot.slane %v528_v31, 4  ;;  %v514_v34 = vsel %vm506_vm2, %v499_v29, 0.0  ;;  %v1025_v35 = vpop.f32.mrb[4].mxu0 }
  0xf6   : > { %v509_v36 = vadd.f32 %v508_v30, %v507_v28  ;;  %v515_v37 = vrot.slane %v514_v34, 4  ;;  %v492_v38 = vadd.f32 %v1025_v35, %v393_v13  ;;  %v483_v39 = vpop.f32.mrb[5].mxu0 }
  0xf7   : > { %v524_v40 = vrot.slane %v523_v32, 2  ;;  %v530_v42 = vadd.f32 %v529_v33, %v528_v31  ;;  %v484_v43 = vadd.f32 %v483_v39, %v393_v13  ;;  %v1026_v44 = vpop.f32.mrb[6].mxu0 }
  0xf8   : > { %v510_v45 = vrot.slane %v509_v36, 2  ;;  %v516_v46 = vadd.f32 %v515_v37, %v514_v34  ;;  %v504_v47 = vmax.f32 %v492_v38, 0.0  ;;  %v495_v48 = vadd.f32 %v1026_v44, %v393_v13  ;;  %v486_v49 = vpop.f32.mrb[7].mxu0 }
  0xf9   : > { %v525_v50 = vadd.f32 %v524_v40, %v523_v32  ;;  %v531_v51 = vrot.slane %v530_v42, 2  ;;  %v502_v52 = vmax.f32 %v484_v43, 0.0  ;;  %v487_v53 = vadd.f32 %v486_v49, %v393_v13 }
  0xfa   : > { %v511_v54 = vadd.f32 %v510_v45, %v509_v36  ;;  %v517_v55 = vrot.slane %v516_v46, 2  ;;  %v549_v56 = vsel %vm506_vm2, %v504_v47, 0.0  ;;  %v505_v57 = vmax.f32 %v495_v48, 0.0 }
  0xfb   : > { %v526_v58 = vrot.slane %v525_v50, 1  ;;  %v532_v59 = vadd.f32 %v531_v51, %v530_v42  ;;  %v550_v60 = vrot.slane %v549_v56, 4  ;;  %v535_v61 = vsel %vm506_vm2, %v502_v52, 0.0 }
  0xfc   : > { %v512_v62 = vrot.slane %v511_v54, 1  ;;  %v518_v63 = vadd.f32 %v517_v55, %v516_v46  ;;  %v536_v0 = vrot.slane %v535_v61, 4  ;;  %v556_v1 = vsel %vm506_vm2, %v505_v57, 0.0 }
  0xfd   : > { %v527_v2 = vadd.f32 %v526_v58, %v525_v50  ;;  %v533_v3 = vrot.slane %v532_v59, 1  ;;  %v551_v4 = vadd.f32 %v550_v60, %v549_v56  ;;  %v557_v5 = vrot.slane %v556_v1, 4 }
  0xfe   : > { %v513_v7 = vadd.f32 %v512_v62, %v511_v54  ;;  %v519_v8 = vrot.slane %v518_v63, 1  ;;  %v537_v9 = vadd.f32 %v536_v0, %v535_v61  ;;  %v503_v11 = vmax.f32 %v487_v53, 0.0 }
  0xff   : > { %v569_v13 = vsub.f32 %v527_v2, %v1327_v41  ;;  %v534_v14 = vadd.f32 %v533_v3, %v532_v59  ;;  %v552_v15 = vrot.slane %v551_v4, 2  ;;  %v558_v16 = vadd.f32 %v557_v5, %v556_v1 }
 0x100   : > { %v567_v17 = vsub.f32 %v513_v7, %v1327_v41  ;;  %v520_v18 = vadd.f32 %v519_v8, %v518_v63  ;;  %v538_v19 = vrot.slane %v537_v9, 2  ;;  %v542_v20 = vsel %vm506_vm2, %v503_v11, 0.0 }
 0x101   : > { %v577_v21 = vpack.c.bf16 %v569_v13, %v569_v13  ;;  %v570_v22 = vsub.f32 %v534_v14, %v1327_v41  ;;  %v553_v23 = vadd.f32 %v552_v15, %v551_v4  ;;  %v559_v24 = vrot.slane %v558_v16, 2  ;;  %v1107_v14 = vld [vmem:[%s1429_s5 + $0x8] sm:$0xff]   ;;  %v386_v15 = vld [vmem:[%s376_s26] sm:$0xf]  ;;  %s998_s26 = sshll.u32 %s1257_s17, 7  ;;  %s1180_s17 = smov [#allocation2]  }
 0x102   : > { %v568_v25 = vsub.f32 %v520_v18, %v1327_v41  ;;  %v539_v26 = vadd.f32 %v538_v19, %v537_v9  ;;  %v543_v27 = vrot.slane %v542_v20, 4  ;;  %v575_v31 = vpack.c.bf16 %v567_v17, %v567_v17  ;;  %1046 = vmatmul.mubr.msk.bf16.vlgmr.msra.gmra.mrb[8].mxu0 %vm420_vm0, %v386_v15  ;;  %s1382_s11 = scalar_lea.hbm %s1434_s10, %s998_s26  ;;  %s1118_s20 = sshll.u32 %s1180_s17, 4  ;;  %s1119_s20 = int_to_ptr.vmem [resolvable:$false] %s1118_s20 }
 0x103   : > { %v578_v28 = vpack.c.bf16 %v570_v22, %v570_v22  ;;  %v554_v29 = vrot.slane %v553_v23, 1  ;;  %v560_v30 = vadd.f32 %v559_v24, %v558_v16  ;;  %v601_v35 = vunpack.c.l.b16 %v577_v21  ;;  %s1120_s25 = scalar_lea.vmem %s1119_s20, 256  ;;  %p1121_p1 = scmp.lt.s32.totalorder %s1384_s28, %s1119_s20 }
 0x104   : > { %v576_v32 = vpack.c.bf16 %v568_v25, %v568_v25  ;;  %v540_v33 = vrot.slane %v539_v26, 1  ;;  %v544_v34 = vadd.f32 %v543_v27, %v542_v20  ;;  %v599_v44 = vunpack.c.l.b16 %v575_v31  ;;  %p1122_p2 = scmp.lt.s32.totalorder %s1120_s25, %s1114_s18 }
 0x105   : > { %v602_v36 = vunpack.c.l.b16 %v578_v28  ;;  %v555_v37 = vadd.f32 %v554_v29, %v553_v23  ;;  %v561_v38 = vrot.slane %v560_v30, 1  ;;  %v610_v48 = vrot.slane %v601_v35, 6 }
 0x106   : > { %v600_v39 = vunpack.c.l.b16 %v576_v32  ;;  %v541_v40 = vadd.f32 %v540_v33, %v539_v26  ;;  %v545_v42 = vrot.slane %v544_v34, 2  ;;  %v589_v16 = vsub.s32 1, %v1312_v10  ;;  %v1108_v10 = vld [vmem:[%s1430_s6] sm:$0xff]   ;;  %p1123_p3 = por %p1122_p2, %p1121_p1 }
 0x107   : > { %v562_v43 = vadd.f32 %v561_v38, %v560_v30  ;;  %v613_v49 = vrot.slane %v602_v36, 5  ;;  %v573_v50 = vsub.f32 %v555_v37, %v1327_v41  ;;  %v992_v30 = vld [vmem:[%s1432_s8] ss:$0 sm:$0xff] }
 0x108   : > { %v607_v45 = vrot.slane %v600_v39, 7  ;;  %v571_v46 = vsub.f32 %v541_v40, %v1327_v41  ;;  %v546_v47 = vadd.f32 %v545_v42, %v544_v34  ;;  %v590_v17 = vrot.slane %v1318_v12, %v589_v16  ;;  %v1109_v12 = vld [vmem:[%s1430_s6 + $0x8] sm:$0xff]   ;;  %p1124_p4 = pnand %p1123_p3, %p1117_p0 }
 0x109   : > { %v574_v53 = vsub.f32 %v562_v43, %v1327_v41  ;;  %v581_v59 = vpack.c.bf16 %v573_v50, %v573_v50 }
 0x10a   : > { %v609_v51 = vsel %vm608_vm3, %v607_v45, %v599_v44  ;;  %v579_v52 = vpack.c.bf16 %v571_v46, %v571_v46  ;;  %v547_v54 = vrot.slane %v546_v47, 1 }
 0x10b   : > { %v612_v55 = vsel %vm611_vm4, %v610_v48, %v609_v51  ;;  %v582_v61 = vpack.c.bf16 %v574_v53, %v574_v53  ;;  %v605_v1 = vunpack.c.l.b16 %v581_v59 }
 0x10c   : > { %v603_v56 = vunpack.c.l.b16 %v579_v52  ;;  %v548_v57 = vadd.f32 %v547_v54, %v546_v47  ;;  %v615_v58 = vsel %vm614_vm5, %v613_v49, %v612_v55 }
 0x10d   : > { %v606_v2 = vunpack.c.l.b16 %v582_v61  ;;  %v622_v5 = vrot.slane %v605_v1, 2 }
 0x10e   : > { %v616_v60 = vrot.slane %v603_v56, 4  ;;  %v572_v62 = vsub.f32 %v548_v57, %v1327_v41  ;;  %v1106_v41 = vld [vmem:[%s1429_s5] sm:$0xff]  }
 0x10f   : > { %v625_v7 = vrot.slane %v606_v2, 1 }
 0x110   : > { %v580_v63 = vpack.c.bf16 %v572_v62, %v572_v62  ;;  %v618_v0 = vsel %vm617_vm6, %v616_v60, %v615_v58 }
 0x112   : > { %v604_v3 = vunpack.c.l.b16 %v580_v63 }
 0x114   : > { %v619_v4 = vrot.slane %v604_v3, 3 }
 0x116   : > { %v621_v8 = vsel %vm620_vm7, %v619_v4, %v618_v0 }
 0x117   : > { %v624_v9 = vsel %vm623_vm8, %v622_v5, %v621_v8 }
 0x118   : > { %v627_v11 = vsel %vm626_vm9, %v625_v7, %v624_v9 }
 0x119   : > { %v628_v13 = vpack.c.b16 %v627_v11, %v627_v11 }
 0x11b   : > { %1032 = vmatmul.mubr.msk.bf16.vlgmr.msra.gmra.mrb[0].mxu1 %vm506_vm2, %v628_v13 }
 0x11c   : > { %1036 = vmatpush3.bf16.msra.mxu1 %v1106_v41  ;;  %1039 = vmatprep.mubr.msk.bf16.mxu1 %vm1179_vm1, %v1178_v6 }
 0x11d   : > { %1037 = vmatprep.subr.bf16.mxu1 %v1178_v6 }
 0x120   : > { %1038 = vmatpush3.bf16.msra.mxu1 %v1107_v14 }
 0x121   : > { %1049 = vmatprep.subr.bf16.mxu1 %v1178_v6 }
 0x1d5   : > { %v790_v25 = vpop.f32.mrb[8].mxu0 }
 0x1d6   : > { %v1047_v26 = vpop.f32.mrb[9].mxu0 }
 0x1d7   : > { %v793_v27 = vpop.f32.mrb[10].mxu0 }
 0x1d8   : > { %v1048_v28 = vpop.f32.mrb[11].mxu0 }
 0x1ee   : > { %v678_v18 = vpop.f32.mrb[0].mxu1 }
 0x1ef   : > { %v679_v19 = vadd.f32 %v678_v18, %v590_v17  ;;  %v1033_v20 = vpop.f32.mrb[1].mxu1 }
 0x1f0   : > { %v681_v21 = vpop.f32.mrb[2].mxu1 }
 0x1f1   : > { %v684_v22 = vmax.f32 %v679_v19, 0.0  ;;  %v1034_v23 = vpop.f32.mrb[3].mxu1 }
 0x1f3   : > { %v687_v24 = vpack.c.bf16 %v684_v22, %v684_v22 }
 0x1f5   : > { %1040 = vmatmul.mubr.msk.bf16.vlgmr.msra.gmra.mrb[4].mxu1 %vm506_vm2, %v687_v24 }
 0x1f6   : > { %1053 = vmatprep.mubr.msk.bf16.mxu1 %vm1179_vm1, %v1178_v6  ;;  %1050 = vmatpush3.bf16.msra.mxu1 %v1108_v10 }
 0x1f7   : > { %1051 = vmatprep.subr.bf16.mxu1 %v1178_v6  ;;  %v993_v6 = vld [vmem:[%s1433_s9] ss:$0 sm:$0xff] }
 0x1fa   : > { %1052 = vmatpush3.bf16.msra.mxu1 %v1109_v12 }
 0x2c8   : > { %v741_v29 = vpop.f32.mrb[4].mxu1 }
 0x2c9   : > { %v791_v31 = vadd.f32 %v790_v25, %v741_v29  ;;  %v1041_v32 = vpop.f32.mrb[5].mxu1 }
 0x2ca   : > { %v744_v33 = vpop.f32.mrb[6].mxu1 }
 0x2cb   : > { %v803_v34 = vadd.f32 %v992_v30, %v791_v31  ;;  %v1042_v35 = vpop.f32.mrb[7].mxu1 }
 0x2cd   : > { %v804_v36 = vmax.f32 %v803_v34, 0.0 }
 0x2cf   : > { %v805_v37 = vpack.c.bf16 %v804_v36, %v804_v36 }
 0x2d1   : > { %1054 = vmatmul.mubr.msk.bf16.vlgmr.msra.gmra.mrb[8].mxu1 %vm506_vm2, %v805_v37 }
 0x3a4   : > { %v866_v38 = vpop.f32.mrb[8].mxu1 }
 0x3a5   : > { %v867_v39 = vadd.f32 %v993_v6, %v866_v38  ;;  %v1055_v40 = vpop.f32.mrb[9].mxu1 }
 0x3a6   : > { %v869_v42 = vpop.f32.mrb[10].mxu1 }
 0x3a7   : > { %872 = vmax.xlane.f32.xlu0 %v867_v39  ;;  %v1056_v43 = vpop.f32.mrb[11].mxu1 }
 0x434   : > { %v873_v44 = vpop.xlane.xlu0 %872 }
 0x435   : > { %v874_v45 = vsub.f32 %v867_v39, %v873_v44 }
 0x437   : > { %v875_v46 = vmul.f32 1.442695, %v874_v45 }
 0x439   : > { %1110 = vpow2.f32 %v875_v46 }
 0x443   : > { %v1111_v47 = vpop.eup %1110 }
 0x444   : > { %877 = vadd.xlane.f32.xlu0 %v1111_v47 }
 0x4d1   : > { %v878_v48 = vpop.xlane.xlu0 %877 }
 0x4d2   : > { %1112 = vrcp.f32 %v878_v48 }
 0x4dc   : > { %v1113_v49 = vpop.eup %1112 }
 0x4dd   : > { %v880_v50 = vmul.f32 %v1113_v49, %v1111_v47 }
 0x4df   : > { %881 = vst [vmem:[%s366_s27] sm:$0xff] %v880_v50 }
 0x4e0   : > { %1127 = shalt.err (!%p1124_p4)
}
 0x4e1   : > { %s1128_s21 = scalar_lea.hbm %s1382_s11, 128  ;;  %s1132_s29 = scalar_lea.hbm %s1434_s10, 256 }
 0x4e2   : > { %p1129_p7 = scmp.ne.s32.totalorder %s1382_s11, %s1128_s21  ;;  %p1133_p10 = scmp.lt.u32.totalorder %s1382_s11, %s1434_s10 }
 0x4e3   : > { %p1134_p11 = scmp.lt.u32.totalorder %s1132_s29, %s1128_s21  ;;  %p1136_p13 = scmp.lt.u32.totalorder %s1128_s21, %s1382_s11 }
 0x4e4   : > { %p1130_p8 = pnand %p1129_p7, %p1274_p5 }
 0x4e5   : > { %p1135_p12 = por %p1134_p11, %p1133_p10 }
 0x4e6   : > { %p1131_p9 = pneg %p1130_p8 }
 0x4e7   : > { %p1137_p0 = por %p1136_p13, %p1135_p12 }
 0x4e9   : > { %p1138_p1 = pnand %p1137_p0, %p1131_p9 }
 0x4eb   : > { %1141 = shalt.err (!%p1138_p1)
}
 0x4ec   : > { %1057 = dma.vmem_to_hbm [thread:$0]  (%p1274_p5), %s1384_s28, 128, %s1382_s11, %s883_s12  }
 0x4ed PF: > { %p1063_p2 = scmp.ge.s32.totalorder %s1176_s16, 2  ;;  %s908_s18 = sand.u32 1, %s1164_s13  }
 0x4ee   : > { %s909_s20 = scalar_lea.sflag [#allocation3], %s908_s18 }
 0x4ef   : > { %p1060_p3 = pnand %p1063_p2, %p1278_p6 }
 0x4f1   : > { %1159 = dma.done.wait (!%p1060_p3), %s909_s20, 128  }
 0x4f2   : > { %1161 = vsyncadd (!%p1060_p3), %s909_s20, 4294967168  ;;  %p20_p4 = scmp.ge.s32.totalorder %s1261_s19, 4   ;;  %s1437_s13 = smov %s1168_s14 }
 0x4f3   : > { %s1438_s14 = smov %s1172_s15  ;;  %s1439_s15 = smov %s1272_s22 }
 0x4f4   : > { %s1440_s16 = smov %s1261_s19  ;;  %22 = sbr.rel (!%p20_p4) target bundleno = 3 (0x3), region = 98 }
 0x4fb   :  { %914 = vsyncpa [#allocation3], 1 }
 0x4fc   :  { %916 = vsyncpa [#allocation3 + $0x1], 1 }

</bundles_post_ra>
